<compile_context>
chip_gen: v7x
topology: tpu7x:2x2x1
jax: 0.10.0
libtpu: 0.0.40
codegen_flags: <defaults>
</compile_context>

<pallas_src>
import jax
import jax.numpy as jnp
from jax.experimental import pallas as pl
from jax.experimental.pallas import tpu as pltpu


def _uncertainty_kernel(x_ref, wt_ref, o_ref):
    # x_ref : (bn, Cin, t_hw)   pixels-on-lanes tile of the input
    # wt_ref: (Cout, Cin)       fused weight (w1 @ w2)^T, float32, resident
    # o_ref : (bn, Cout, t_hw)  lane-dense output tile
    wt = wt_ref[...]                               # (Cout, Cin) f32
    bn = x_ref.shape[0]
    for b in range(bn):                            # static unroll, bn <= 8
        x = x_ref[b].astype(jnp.float32)           # (Cin, t_hw)
        # K = Cin is tiny; let the MXU do the contraction so VPU/vst slots are
        # free for the store stream (kernel is HBM-write-bound).
        acc = jnp.dot(wt, x, preferred_element_type=jnp.float32)  # (Cout, t_hw)
        o_ref[b] = acc.astype(o_ref.dtype)


def _pick_pixel_tile(hw, max_t_hw):
    """Fixed lane-dense pixel tile for a cdiv grid (ragged last block masked)."""
    if hw <= 128:
        return hw                       # full extent: always legal, single block
    # Aim for >= ~4 pixel steps (pipelining + v7x TC split), cap the tile size.
    t = min(max_t_hw, max(128, hw // 4))
    return max(128, (t // 128) * 128)   # multiple of 128 -> unmasked vst


def _pick_batch_tile(n, out_bytes_per_step, target_bytes=256 * 1024, cap=8):
    """Fold a few batch images per step when HW is small, so each grid step
    writes >= ~256 KiB of output.  bn must divide N (keeps blocks unmasked)."""
    if n <= 1 or out_bytes_per_step >= target_bytes:
        return 1
    want = min(n, cap, max(1, target_bytes // max(1, out_bytes_per_step)))
    for bn in range(want, 0, -1):
        if n % bn == 0:
            return bn
    return 1


def uncertainty_block(x_nchw, w1, w2, *, max_t_hw=4096):
    """x_nchw: (N, Cin, H, W); w1: (Cin, Cmid); w2: (Cmid, 48) -> (N, 48, H, W).

    w1 / w2 are the PyTorch 1x1 conv weights squeezed of their spatial dims and
    transposed into matmul layout (Cin_layer, Cout_layer).
    """
    N, Cin, H, W = x_nchw.shape
    Cmid = w1.shape[1]
    Cout = w2.shape[1]
    assert w1.shape[0] == Cin and w2.shape[0] == Cmid
    HW = H * W

    # Fuse the two 1x1 convs (no bias, no nonlinearity in between): exact.
    # Keep the fused weight in float32 (no extra rounding through x.dtype).
    wt = jnp.dot(w1.astype(jnp.float32), w2.astype(jnp.float32),
                 preferred_element_type=jnp.float32).T          # (Cout, Cin) f32

    # NCHW-native view: channels on sublanes, pixels on lanes.  Free reshape.
    x3d = x_nchw.reshape(N, Cin, HW)

    t_hw = _pick_pixel_tile(HW, max_t_hw)
    out_bytes_per_step = Cout * t_hw * jnp.dtype(x_nchw.dtype).itemsize
    bn = _pick_batch_tile(N, out_bytes_per_step)
    grid = (N // bn, pl.cdiv(HW, t_hw))

    y3d = pl.pallas_call(
        _uncertainty_kernel,
        out_shape=jax.ShapeDtypeStruct((N, Cout, HW), x_nchw.dtype),
        grid_spec=pltpu.PrefetchScalarGridSpec(
            num_scalar_prefetch=0,
            grid=grid,
            in_specs=[
                # (bn, Cin, t_hw) pixel tile; Cin equals the full channel dim.
                pl.BlockSpec((bn, Cin, t_hw), lambda nb, j: (nb, 0, j)),
                # Full fused weight, resident across the whole grid (768 B).
                pl.BlockSpec((Cout, Cin), lambda nb, j: (0, 0)),
            ],
            # Lane-dense output tile: 48 sublanes x t_hw lanes (t_hw % 128 == 0
            # or t_hw == HW); only the ragged last pixel block gets masked.
            out_specs=pl.BlockSpec((bn, Cout, t_hw), lambda nb, j: (nb, 0, j)),
        ),
        compiler_params=pltpu.CompilerParams(
            dimension_semantics=("parallel", "parallel")),
    )(x3d, wt)

    # Already NCHW-ordered; just restore the spatial dims.
    return y3d.reshape(N, Cout, H, W)


def reference(x_nchw, w1, w2):
    # Pure-JAX reference of the two 1x1 convs (per-pixel channel matmuls).
    y = jnp.einsum("nchw,cm->nmhw", x_nchw, w1)
    y = jnp.einsum("nmhw,mo->nohw", y, w2)
    return y


if __name__ == "__main__":
    key = jax.random.PRNGKey(0)
    k_x, k_w1, k_w2 = jax.random.split(key, 3)

    # Small shapes consistent with the module: in_size=4 -> mid=2 -> out=48.
    N, Cin, H, W = 2, 4, 16, 16
    Cmid, Cout = Cin // 2, 48

    x = jax.random.normal(k_x, (N, Cin, H, W), dtype=jnp.float32)
    # PyTorch conv weights would be (Cout, Cin, 1, 1); we store them
    # deterministically in (Cin_layer, Cout_layer) matmul layout.
    w1 = jax.random.normal(k_w1, (Cin, Cmid), dtype=jnp.float32) * 0.1
    w2 = jax.random.normal(k_w2, (Cmid, Cout), dtype=jnp.float32) * 0.1

    y = uncertainty_block(x, w1, w2)
    y = jax.block_until_ready(y)

    y_ref = reference(x, w1, w2)
    assert y.shape == (N, Cout, H, W), y.shape
    # Tolerance covers possible reduced-precision MXU passes for f32 matmuls.
    assert jnp.allclose(y, y_ref, atol=1e-3, rtol=1e-3), float(
        jnp.max(jnp.abs(y - y_ref)))

    print("KERNEL_OK")
</pallas_src>

<mosaic_0001>
module attributes {stable_mosaic.version = 11 : i64} {
  func.func @_uncertainty_kernel(%arg0: i32, %arg1: i32, %arg2: memref<2x4x128xf32, #tpu.memory_space<vmem>>, %arg3: memref<48x4xf32, #tpu.memory_space<vmem>>, %arg4: memref<2x48x128xf32, #tpu.memory_space<vmem>>) attributes {dimension_semantics = [#tpu.dimension_semantics<parallel>, #tpu.dimension_semantics<parallel>], iteration_bounds = array<i64: 1, 2>, scalar_prefetch = 0 : i64, scratch_operands = 0 : i64, tpu.core_type = #tpu.core_type<tc>, window_params = [{transform_indices = @transform_0, window_bounds = array<i64: 2, 4, 128>}, {pipeline_mode = #tpu.pipeline_mode<synchronous>, transform_indices = @transform_1, window_bounds = array<i64: 48, 4>}, {transform_indices = @transform_2, window_bounds = array<i64: 2, 48, 128>}]} {
    %c0 = arith.constant 0 : index
    %c0_0 = arith.constant 0 : index
    %0 = vector.load %arg3[%c0, %c0_0] : memref<48x4xf32, #tpu.memory_space<vmem>>, vector<48x4xf32>
    %c0_1 = arith.constant 0 : index
    %c0_2 = arith.constant 0 : index
    %c0_3 = arith.constant 0 : index
    %1 = vector.load %arg2[%c0_1, %c0_2, %c0_3] : memref<2x4x128xf32, #tpu.memory_space<vmem>>, vector<1x4x128xf32>
    %2 = vector.shape_cast %1 : vector<1x4x128xf32> to vector<4x128xf32>
    %cst = arith.constant dense<0.000000e+00> : vector<48x128xf32>
    %3 = tpu.matmul %0, %2, %cst {dimension_numbers = #tpu.dot_dimension_numbers<[1], [0], [0], [1], [0, 0, 1, 1], [], []>} : vector<48x4xf32>, vector<4x128xf32>, vector<48x128xf32> -> vector<48x128xf32>
    %c0_4 = arith.constant 0 : index
    %c0_5 = arith.constant 0 : index
    %c0_6 = arith.constant 0 : index
    %4 = vector.load %arg4[%c0_4, %c0_5, %c0_6] : memref<2x48x128xf32, #tpu.memory_space<vmem>>, vector<1x48x128xf32>
    %5 = vector.shape_cast %4 : vector<1x48x128xf32> to vector<48x128xf32>
    %6 = vector.shape_cast %3 : vector<48x128xf32> to vector<1x48x128xf32>
    tpu.vector_store %arg4[%c0_4, %c0_5, %c0_6], %6 {strides = array<i32>} : memref<2x48x128xf32, #tpu.memory_space<vmem>>, vector<1x48x128xf32>,
    %c1 = arith.constant 1 : index
    %c0_7 = arith.constant 0 : index
    %c0_8 = arith.constant 0 : index
    %7 = vector.load %arg2[%c1, %c0_7, %c0_8] : memref<2x4x128xf32, #tpu.memory_space<vmem>>, vector<1x4x128xf32>
    %8 = vector.shape_cast %7 : vector<1x4x128xf32> to vector<4x128xf32>
    %cst_9 = arith.constant dense<0.000000e+00> : vector<48x128xf32>
    %9 = tpu.matmul %0, %8, %cst_9 {dimension_numbers = #tpu.dot_dimension_numbers<[1], [0], [0], [1], [0, 0, 1, 1], [], []>} : vector<48x4xf32>, vector<4x128xf32>, vector<48x128xf32> -> vector<48x128xf32>
    %c1_10 = arith.constant 1 : index
    %c0_11 = arith.constant 0 : index
    %c0_12 = arith.constant 0 : index
    %10 = vector.load %arg4[%c1_10, %c0_11, %c0_12] : memref<2x48x128xf32, #tpu.memory_space<vmem>>, vector<1x48x128xf32>
    %11 = vector.shape_cast %10 : vector<1x48x128xf32> to vector<48x128xf32>
    %12 = vector.shape_cast %9 : vector<48x128xf32> to vector<1x48x128xf32>
    tpu.vector_store %arg4[%c1_10, %c0_11, %c0_12], %12 {strides = array<i32>} : memref<2x48x128xf32, #tpu.memory_space<vmem>>, vector<1x48x128xf32>,
    return
  }
  func.func @transform_0(%arg0: i32, %arg1: i32) -> (i32, i32, i32) {
    %c0_i32 = arith.constant 0 : i32
    %c0_i32_0 = arith.constant 0 : i32
    return %arg0, %c0_i32, %arg1 : i32, i32, i32
  }
  func.func @transform_1(%arg0: i32, %arg1: i32) -> (i32, i32) {
    %c0_i32 = arith.constant 0 : i32
    %c0_i32_0 = arith.constant 0 : i32
    %c0_i32_1 = arith.constant 0 : i32
    return %c0_i32, %c0_i32_0 : i32, i32
  }
  func.func @transform_2(%arg0: i32, %arg1: i32) -> (i32, i32, i32) {
    %c0_i32 = arith.constant 0 : i32
    %c0_i32_0 = arith.constant 0 : i32
    return %arg0, %c0_i32, %arg1 : i32, i32, i32
  }
}

</mosaic_0001>

<bundles_post_ra>
// kernel: tpu_custom_call.1
= control target key start
LH: loop header
LB: loop body
LE: loop exit
PB: predicated region body
PF: predicated region fallthrough
CT: control target
= control target key end

     0   :  { %7 = vsyncpa [#allocation4], 0  ;;  %s922_s0 = inlined_call_operand.vmem [shape: f32[2,4,256], index: 0, kind: input, shape index: {}]   ;;  %s923_s1 = inlined_call_operand.vmem [shape: f32[48,4], index: 1, kind: input, shape index: {}]   ;;  %s924_s2 = inlined_call_operand.hbm [shape: f32[2,48,256], index: 2, kind: output, shape index: {}]  }
   0x1   :  { %9 = vsyncpa [#allocation4 + $0x1], 0  ;;  %s768_s9 = smov 0   ;;  %s770_s10 = smov 0  }
   0x2   :  { %s772_s11 = smov 0   ;;  %s774_s12 = smov 0  }
   0x3   :  { %s776_s13 = smov 0   ;;  %s778_s14 = smov 0  }
   0x4 LB: > { %s542_s15 = sadd.s32 4294967295, %s747_s14   ;;  %s543_s16 = sadd.s32 4294967294, %s747_s14   ;;  %s747_s14 = sphi %s778_s14, %s15_s14   ;;  %s743_s13 = sphi %s776_s13, %s931_s13   ;;  %s739_s12 = sphi %s774_s12, %s930_s12   ;;  %s735_s11 = sphi %s772_s11, %s929_s11   ;;  %s731_s10 = sphi %s770_s10, %s928_s10   ;;  %s727_s9 = sphi %s768_s9, %s927_s9  }
   0x5   : > { %s24_s17 = sadd.s32 1, %s743_s13  ;;  %s36_s18 = sadd.s32 1, %s735_s11 }
   0x6   : > { %p25_p0 = scmp.ge.s32.totalorder %s24_s17, 2  ;;  %p43_p1 = scmp.ne.s32.totalorder %s735_s11, %s731_s10 }
   0x7   : > { %p44_p2 = scmp.eq.s32.totalorder %s747_s14, 0  ;;  %p96_p3 = scmp.eq.s32.totalorder %s542_s15, 1 }
   0x8   : > { %s933_s17 = smov (%p25_p0, %s24_s17), 0  ;;  %p101_p6 = scmp.ne.s32.totalorder %s731_s10, %s727_s9 }
   0x9   : > { %p45_p4 = por %p44_p2, %p43_p1  ;;  %p807_p5 = por %p96_p3, %p43_p1 }
   0xa   : > { %s32_s20 = ssub.s32 %s743_s13, %s933_s17  ;;  %p102_p8 = scmp.eq.s32.totalorder %s543_s16, 1 }
   0xb   : > { %p34_p7 = scmp.eq.s32.totalorder %s32_s20, 0  ;;  %p545_p10 = scmp.ge.s32.totalorder %s747_s14, 2 }
   0xc   : > { %p818_p9 = por %p102_p8, %p101_p6 }
   0xd   : > { %s816_s21 = scalar_select %p34_p7, %s735_s11, %s36_s18  }
   0xe   : > { %121 = sbr.rel (%p545_p10) target bundleno = 28 (0x1c), region = 20 }
  0x15   : > { %124 = sbr.rel (!%p45_p4) target bundleno = 28 (0x1c), region = 24  ;;  %s126_s23 = sand.u32 (%p45_p4), 1, %s735_s11  }
  0x16   : > { %s547_s24 = sshll.u32 (%p45_p4), %s743_s13, 2  ;;  %s546_s25 = sshll.u32 (%p45_p4), %s126_s23, 3 }
  0x17   : > { %s133_s28 = scalar_lea.vmem (%p45_p4), %s922_s0, %s547_s24  ;;  %s128_s29 = scalar_lea.vmem (%p45_p4), [#allocation2], %s546_s25 }
  0x18   : > { %v149_v0 = vld [vmem:[%s133_s28] sm:$0xf] (%p45_p4)  ;;  %v151_v1 = vld [vmem:[%s133_s28 + $0x8] sm:$0xf] (%p45_p4) }
  0x19   : > { %150 = vst [vmem:[%s128_s29] sm:$0xf] (%p45_p4), %v149_v0  ;;  %152 = vst [vmem:[%s128_s29 + $0x4] sm:$0xf] (%p45_p4), %v151_v1 }
  0x1c PF: > { %p548_p11 = scmp.ge.s32.totalorder %s747_s14, 1  ;;  %p178_p12 = scmp.lt.s32.totalorder %s747_s14, 3 }
  0x1e   : > { %p179_p13 = pnand %p548_p11, %p178_p12 }
  0x1f   : > { %s833_s30 = sand.u32 (!%p179_p13), 1, %s731_s10   ;;  %v208_v2 = vld [vmem:[%s923_s1] sm:$0xff] (!%p179_p13)  ;;  %vm215_vm0 = vcmask (!%p179_p13), 31744   ;;  %vm234_vm1 = vcmask (!%p179_p13), 1043456   ;;  %v209_v5 = vld [vmem:[%s923_s1 + $0x8] sm:$0xff] (!%p179_p13)  ;;  %v210_v6 = vld [vmem:[%s923_s1 + $0x10] sm:$0xff] (!%p179_p13) }
  0x20   : > { %182 = sbr.rel (%p179_p13) target bundleno = 274 (0x112), region = 65  ;;  %s549_s5 = sshll.u32 (!%p179_p13), %s833_s30, 3  ;;  %590 = vmatprep.mubr.msk.f32.mxu0 (!%p179_p13), %vm215_vm0, %v208_v2  ;;  %601 = vmatprep.mubr.msk.f32.mxu1 (!%p179_p13), %vm215_vm0, %v208_v2  ;;  %v211_v7 = vld [vmem:[%s923_s1 + $0x18] sm:$0xff] (!%p179_p13)  ;;  %v212_v8 = vld [vmem:[%s923_s1 + $0x20] sm:$0xff] (!%p179_p13)  ;;  %v213_v9 = vld [vmem:[%s923_s1 + $0x28] sm:$0xff] (!%p179_p13) }
  0x21   : > { %s187_s6 = scalar_lea.vmem (!%p179_p13), [#allocation2], %s549_s5  ;;  %s610_s27 = smul.u32 (!%p179_p13), 96, %s833_s30 }
  0x22   : > { %v214_v3 = vld [vmem:[%s187_s6] sm:$0xf] (!%p179_p13)  ;;  %v557_v4 = vld [vmem:[%s187_s6 + $0x4] sm:$0xf] (!%p179_p13)  ;;  %s571_s3 = sshll.u32 (!%p179_p13), %s739_s12, 7  ;;  %s447_s12 = scalar_lea.sflag (!%p179_p13), [#allocation4], %s833_s30 }
  0x23   : > { %588 = vmatprep.subr.msk.mxu0 (!%p179_p13), %vm234_vm1, %v214_v3  ;;  %599 = vmatprep.subr.msk.mxu1 (!%p179_p13), %vm234_vm1, %v557_v4  ;;  %s205_s28 = scalar_lea.vmem (!%p179_p13), [#allocation3], %s610_s27  ;;  %s873_s6 = scalar_lea.hbm (!%p179_p13), %s924_s2, %s571_s3 }
  0x24   : > { %589 = vmatpush3.msk.msra.mxu0 (!%p179_p13), %vm234_vm1, %v214_v3  ;;  %600 = vmatpush3.msk.msra.mxu1 (!%p179_p13), %vm234_vm1, %v557_v4  ;;  %s462_s29 = sshll.u32 (!%p179_p13), %s205_s28, 4  ;;  %s749_s8 = smov (!%p179_p13), [#allocation3]   ;;  %s868_s29 = int_to_ptr.vmem [resolvable:$true] %s462_s29 }
  0x25   : > { %591 = vmatmul.mubr.msk.f32.vlgmr.msra.gmra.mrb[0].mxu0 (!%p179_p13), %vm215_vm0, %v209_v5  ;;  %602 = vmatmul.mubr.msk.f32.vlgmr.msra.gmra.mrb[0].mxu1 (!%p179_p13), %vm215_vm0, %v209_v5  ;;  %s669_s7 = scalar_lea.vmem (!%p179_p13), %s868_s29, 1536  ;;  %s673_s15 = sshll.u32 (!%p179_p13), %s749_s8, 4  ;;  %s674_s15 = int_to_ptr.vmem [resolvable:$false] %s673_s15 }
  0x26   : > { %593 = vmatprep.mubr.msk.f32.mxu0 (!%p179_p13), %vm215_vm0, %v210_v6  ;;  %604 = vmatprep.mubr.msk.f32.mxu1 (!%p179_p13), %vm215_vm0, %v210_v6  ;;  %p670_p0 = scmp.ne.s32.totalorder (!%p179_p13), %s868_s29, %s669_s7  ;;  %s675_s16 = scalar_lea.vmem (!%p179_p13), %s674_s15, 3072 }
  0x27   : > { %p676_p3 = scmp.lt.s32.totalorder %s868_s29, %s674_s15  ;;  %p677_p4 = scmp.lt.s32.totalorder %s675_s16, %s669_s7 }
  0x28   : > { %p671_p1 = pnand %p670_p0, %p807_p5 }
  0x29   : > { %594 = vmatmul.mubr.msk.f32.gmra.mrb[2].mxu0 %vm215_vm0, %v211_v7  ;;  %605 = vmatmul.mubr.msk.f32.gmra.mrb[2].mxu1 %vm215_vm0, %v211_v7  ;;  %p678_p6 = por %p677_p4, %p676_p3 }
  0x2a   : > { %596 = vmatprep.mubr.msk.f32.mxu0 %vm215_vm0, %v212_v8  ;;  %607 = vmatprep.mubr.msk.f32.mxu1 %vm215_vm0, %v212_v8  ;;  %p672_p2 = pneg %p671_p1 }
  0x2c   : > { %p679_p7 = pnand %p678_p6, %p672_p2 }
  0x2d   : > { %597 = vmatmul.mubr.msk.f32.gmra.mrb[4].mxu0 %vm215_vm0, %v213_v9  ;;  %608 = vmatmul.mubr.msk.f32.gmra.mrb[4].mxu1 %vm215_vm0, %v213_v9 }
  0xf8   : > { %v592_v10 = vpop.f32.mrb[0].mxu0  ;;  %v603_v11 = vpop.f32.mrb[0].mxu1 }
  0xf9   : > { %334 = vst [vmem:[%s205_s28 + $0x8] sm:$0xff] %v592_v10  ;;  %566 = vst [vmem:[%s205_s28 + $0x38] sm:$0xff] %v603_v11  ;;  %v304_v12 = vpop.f32.mrb[1].mxu0  ;;  %v410_v13 = vpop.f32.mrb[1].mxu1 }
  0xfa   : > { %333 = vst [vmem:[%s205_s28] sm:$0xff] %v304_v12  ;;  %565 = vst [vmem:[%s205_s28 + $0x30] sm:$0xff] %v410_v13 }
  0xfc   : > { %v595_v14 = vpop.f32.mrb[2].mxu0  ;;  %v606_v15 = vpop.f32.mrb[2].mxu1 }
  0xfd   : > { %336 = vst [vmem:[%s205_s28 + $0x18] sm:$0xff] %v595_v14  ;;  %568 = vst [vmem:[%s205_s28 + $0x48] sm:$0xff] %v606_v15  ;;  %v314_v16 = vpop.f32.mrb[3].mxu0  ;;  %v420_v17 = vpop.f32.mrb[3].mxu1 }
  0xfe   : > { %335 = vst [vmem:[%s205_s28 + $0x10] sm:$0xff] %v314_v16  ;;  %567 = vst [vmem:[%s205_s28 + $0x40] sm:$0xff] %v420_v17 }
 0x100   : > { %v598_v18 = vpop.f32.mrb[4].mxu0  ;;  %v609_v19 = vpop.f32.mrb[4].mxu1 }
 0x101   : > { %338 = vst [vmem:[%s205_s28 + $0x28] sm:$0xff] %v598_v18  ;;  %570 = vst [vmem:[%s205_s28 + $0x58] sm:$0xff] %v609_v19  ;;  %v324_v20 = vpop.f32.mrb[5].mxu0  ;;  %v430_v21 = vpop.f32.mrb[5].mxu1 }
 0x102   : > { %337 = vst [vmem:[%s205_s28 + $0x20] sm:$0xff] %v324_v20  ;;  %569 = vst [vmem:[%s205_s28 + $0x50] sm:$0xff] %v430_v21 }
 0x103   : > { %682 = shalt.err (!%p679_p7)
}
 0x104   : > { %s683_s18 = scalar_lea.hbm %s873_s6, 1536  ;;  %s687_s24 = scalar_lea.hbm %s924_s2, 3072 }
 0x105   : > { %p684_p8 = scmp.ne.s32.totalorder %s873_s6, %s683_s18  ;;  %p688_p13 = scmp.lt.u32.totalorder %s873_s6, %s924_s2 }
 0x106   : > { %p689_p0 = scmp.lt.u32.totalorder %s687_s24, %s683_s18  ;;  %p691_p2 = scmp.lt.u32.totalorder %s683_s18, %s873_s6 }
 0x107   : > { %p685_p11 = pnand %p684_p8, %p807_p5 }
 0x108   : > { %p690_p1 = por %p689_p0, %p688_p13 }
 0x109   : > { %p686_p12 = pneg %p685_p11 }
 0x10a   : > { %p692_p3 = por %p691_p2, %p690_p1 }
 0x10c   : > { %p693_p4 = pnand %p692_p3, %p686_p12 }
 0x10e   : > { %696 = shalt.err (!%p693_p4)
}
 0x10f   : > { %s750_s27 = smov 128   ;;  %s751_s28 = smov 256  }
 0x110   : > { %s752_s3 = smov 8  }
 0x111   : > { %611 = dma.vmem_to_hbm [thread:$0]  (%p807_p5), %s868_s29, 1536, %s873_s6, %s447_s12, %s750_s27, %s751_s28, %s752_s3  }
 0x112 PF: > { %s477_s4 = sand.u32 1, %s727_s9   ;;  %p614_p6 = pnand %p545_p10, %p818_p9 }
 0x113   : > { %s478_s5 = scalar_lea.sflag [#allocation4], %s477_s4 }
 0x114   : > { %722 = dma.done.wait (!%p614_p6), %s478_s5, 1536  }
 0x115   : > { %724 = vsyncadd (!%p614_p6), %s478_s5, 4294965760  ;;  %s15_s14 = sadd.s32 1, %s747_s14   ;;  %s927_s9 = smov %s731_s10 }
 0x116   : > { %p12_p7 = scmp.ge.s32.totalorder %s15_s14, 4   ;;  %s928_s10 = smov %s735_s11 }
 0x117   : > { %s929_s11 = smov %s816_s21  ;;  %s930_s12 = smov %s743_s13 }
 0x118   : > { %s931_s13 = smov %s933_s17  ;;  %14 = sbr.rel (!%p12_p7) target bundleno = 4 (0x4), region = 111 }
 0x11f   :  { %483 = vsyncpa [#allocation4], 1 }
 0x120   :  { %485 = vsyncpa [#allocation4 + $0x1], 1 }

</bundles_post_ra>
